<compile_context>
chip_gen: v6e
topology: v6e:2x2x1
jax: 0.10.0
libtpu: 0.0.40
codegen_flags: <defaults>
</compile_context>

<pallas_src>
import functools

import jax
import jax.numpy as jnp
from jax.experimental import pallas as pl
from jax.experimental.pallas import tpu as pltpu


def _round_up(n, m):
    return ((n + m - 1) // m) * m


def discriminator_kernel(x_ref,
                         w1_ref, b1_ref,
                         w2_ref, b2_ref,
                         w3_ref, b3_ref,
                         w4_ref, b4_ref,
                         o_ref):
    """One batch tile of the MLP: 3 MXU matmuls + VPU output layer + sigmoid."""
    neg_slope = jnp.float32(0.01)

    # Layer 1: Linear + (Dropout = id) + LeakyReLU.  bf16 in, f32 accumulate.
    h = jnp.dot(x_ref[...], w1_ref[...],
                preferred_element_type=jnp.float32) + b1_ref[...]
    h = jnp.where(h > 0, h, neg_slope * h)

    # Layer 2
    h = jnp.dot(h.astype(jnp.bfloat16), w2_ref[...],
                preferred_element_type=jnp.float32) + b2_ref[...]
    h = jnp.where(h > 0, h, neg_slope * h)

    # Layer 3
    h = jnp.dot(h.astype(jnp.bfloat16), w3_ref[...],
                preferred_element_type=jnp.float32) + b3_ref[...]
    h = jnp.where(h > 0, h, neg_slope * h)

    # Output layer: Linear(h_dim, 1) as a VPU multiply + lane reduction
    # (an MXU matmul with N=1 would waste 127/128 output lanes).
    logits = jnp.sum(h * w4_ref[...], axis=-1, keepdims=True) + b4_ref[0, 0]

    # (Dropout = id) + numerically stable sigmoid.
    o_ref[...] = jax.nn.sigmoid(logits).astype(o_ref.dtype)


@functools.partial(jax.jit, static_argnames=("tile_m",))
def discriminator_forward(x, params, tile_m=256):
    """x: (B, H); params: dict of pre-transposed weights/biases. Returns (B, 1)."""
    B, H = x.shape
    w1, b1 = params["w1"], params["b1"]
    w2, b2 = params["w2"], params["b2"]
    w3, b3 = params["w3"], params["b3"]
    w4, b4 = params["w4"], params["b4"]

    # Guard against PyTorch-layout (out, in) weights being passed by mistake:
    # the kernel expects (in, out) for w1..w3 and a (1, H) row for w4.
    assert w1.shape == (H, H) and w2.shape == (H, H) and w3.shape == (H, H)
    assert w4.shape == (1, H) and b4.shape == (1, 1)

    # bf16 datapath into the MXU; accumulation stays f32 inside the kernel.
    x = x.astype(jnp.bfloat16)

    # Pad the batch to a multiple of the tile (sublane-aligned) and tile it.
    tile_m = min(tile_m, _round_up(B, 8))
    Bp = _round_up(B, tile_m)
    if Bp != B:
        x = jnp.pad(x, ((0, Bp - B), (0, 0)))
    grid = (Bp // tile_m,)

    const2d = lambda i: (0, 0)  # grid-invariant -> stays VMEM-resident

    out = pl.pallas_call(
        discriminator_kernel,
        out_shape=jax.ShapeDtypeStruct((Bp, 1), jnp.float32),
        grid=grid,
        in_specs=[
            pl.BlockSpec((tile_m, H), lambda i: (i, 0)),   # x tile
            pl.BlockSpec((H, H), const2d),                 # w1 (bf16)
            pl.BlockSpec((1, H), const2d),                 # b1 (f32)
            pl.BlockSpec((H, H), const2d),                 # w2 (bf16)
            pl.BlockSpec((1, H), const2d),                 # b2 (f32)
            pl.BlockSpec((H, H), const2d),                 # w3 (bf16)
            pl.BlockSpec((1, H), const2d),                 # b3 (f32)
            pl.BlockSpec((1, H), const2d),                 # w4 row (f32)
            pl.BlockSpec(memory_space=pltpu.MemorySpace.SMEM),  # b4 scalar
        ],
        out_specs=pl.BlockSpec((tile_m, 1), lambda i: (i, 0)),
        compiler_params=pltpu.CompilerParams(
            dimension_semantics=("parallel",)),
    )(x, w1, b1, w2, b2, w3, b3, w4, b4)

    return out[:B]


def init_params(key, h_dim):
    """Deterministic synthetic init (shapes match the nn.Linear layers)."""
    ks = jax.random.split(key, 8)
    scale = 1.0 / jnp.sqrt(jnp.float32(h_dim))
    uni = lambda k, shape: jax.random.uniform(k, shape, jnp.float32, -scale, scale)
    # Weights stored as (in, out) == PyTorch weight.T; w1..w3 in bf16.
    return dict(
        w1=uni(ks[0], (h_dim, h_dim)).astype(jnp.bfloat16),
        b1=uni(ks[1], (1, h_dim)),
        w2=uni(ks[2], (h_dim, h_dim)).astype(jnp.bfloat16),
        b2=uni(ks[3], (1, h_dim)),
        w3=uni(ks[4], (h_dim, h_dim)).astype(jnp.bfloat16),
        b3=uni(ks[5], (1, h_dim)),
        w4=uni(ks[6], (1, h_dim)),     # stored as a (1, H) row for the VPU epilogue
        b4=uni(ks[7], (1, 1)),
    )


def reference_forward(x, p):
    """Pure-JAX reference mirroring the kernel's bf16-in / f32-accumulate path."""
    neg = jnp.float32(0.01)
    h = jnp.dot(x.astype(jnp.bfloat16), p["w1"],
                preferred_element_type=jnp.float32) + p["b1"]
    h = jnp.where(h > 0, h, neg * h)
    h = jnp.dot(h.astype(jnp.bfloat16), p["w2"],
                preferred_element_type=jnp.float32) + p["b2"]
    h = jnp.where(h > 0, h, neg * h)
    h = jnp.dot(h.astype(jnp.bfloat16), p["w3"],
                preferred_element_type=jnp.float32) + p["b3"]
    h = jnp.where(h > 0, h, neg * h)
    logits = jnp.sum(h * p["w4"], axis=-1, keepdims=True) + p["b4"][0, 0]
    return jax.nn.sigmoid(logits)


if __name__ == "__main__":
    # Small shapes consistent with the module; batch tiled across the grid.
    B, H = 256, 32
    key = jax.random.PRNGKey(0)
    kx, kp = jax.random.split(key)
    x = jax.random.normal(kx, (B, H), jnp.float32)
    params = init_params(kp, H)

    # TODO(synk): dropout layers are identity here (eval mode); a training-mode
    # variant would use pltpu.prng_seed / pltpu.stateful_bernoulli in-kernel.
    out = discriminator_forward(x, params, tile_m=128)
    out = jax.block_until_ready(out)

    ref = reference_forward(x, params)
    assert out.shape == (B, 1)
    assert jnp.allclose(out, ref, atol=1e-3, rtol=1e-3), (
        float(jnp.max(jnp.abs(out - ref))))
    print("KERNEL_OK")
</pallas_src>

<mosaic_0001>
module attributes {stable_mosaic.version = 11 : i64} {
  func.func @discriminator_kernel(%arg0: i32, %arg1: memref<128x32xbf16, #tpu.memory_space<vmem>>, %arg2: memref<32x32xbf16, #tpu.memory_space<vmem>>, %arg3: memref<1x32xf32, #tpu.memory_space<vmem>>, %arg4: memref<32x32xbf16, #tpu.memory_space<vmem>>, %arg5: memref<1x32xf32, #tpu.memory_space<vmem>>, %arg6: memref<32x32xbf16, #tpu.memory_space<vmem>>, %arg7: memref<1x32xf32, #tpu.memory_space<vmem>>, %arg8: memref<1x32xf32, #tpu.memory_space<vmem>>, %arg9: memref<1x1xf32, #tpu.memory_space<smem>>, %arg10: memref<128x1xf32, #tpu.memory_space<vmem>>) attributes {dimension_semantics = [#tpu.dimension_semantics<parallel>], iteration_bounds = array<i64: 2>, scalar_prefetch = 0 : i64, scratch_operands = 0 : i64, tpu.core_type = #tpu.core_type<tc>, window_params = [{transform_indices = @transform_0, window_bounds = array<i64: 128, 32>}, {pipeline_mode = #tpu.pipeline_mode<synchronous>, transform_indices = @transform_1, window_bounds = array<i64: 32, 32>}, {pipeline_mode = #tpu.pipeline_mode<synchronous>, transform_indices = @transform_2, window_bounds = array<i64: 1, 32>}, {pipeline_mode = #tpu.pipeline_mode<synchronous>, transform_indices = @transform_3, window_bounds = array<i64: 32, 32>}, {pipeline_mode = #tpu.pipeline_mode<synchronous>, transform_indices = @transform_4, window_bounds = array<i64: 1, 32>}, {pipeline_mode = #tpu.pipeline_mode<synchronous>, transform_indices = @transform_5, window_bounds = array<i64: 32, 32>}, {pipeline_mode = #tpu.pipeline_mode<synchronous>, transform_indices = @transform_6, window_bounds = array<i64: 1, 32>}, {pipeline_mode = #tpu.pipeline_mode<synchronous>, transform_indices = @transform_7, window_bounds = array<i64: 1, 32>}, {transform_indices = @transform_8, window_bounds = array<i64: 1, 1>}, {transform_indices = @transform_9, window_bounds = array<i64: 128, 1>}]} {
    %c0 = arith.constant 0 : index
    %c0_0 = arith.constant 0 : index
    %0 = vector.load %arg1[%c0, %c0_0] : memref<128x32xbf16, #tpu.memory_space<vmem>>, vector<128x32xbf16>
    %c0_1 = arith.constant 0 : index
    %c0_2 = arith.constant 0 : index
    %1 = vector.load %arg2[%c0_1, %c0_2] : memref<32x32xbf16, #tpu.memory_space<vmem>>, vector<32x32xbf16>
    %cst = arith.constant dense<0.000000e+00> : vector<128x32xf32>
    %2 = tpu.matmul %0, %1, %cst {dimension_numbers = #tpu.dot_dimension_numbers<[1], [0], [0], [1], [0, 0, 1, 1], [], []>} : vector<128x32xbf16>, vector<32x32xbf16>, vector<128x32xf32> -> vector<128x32xf32>
    %c0_3 = arith.constant 0 : index
    %c0_4 = arith.constant 0 : index
    %3 = vector.load %arg3[%c0_3, %c0_4] : memref<1x32xf32, #tpu.memory_space<vmem>>, vector<1x32xf32>
    %4 = vector.broadcast %3 : vector<1x32xf32> to vector<128x32xf32>
    %5 = arith.addf %2, %4 : vector<128x32xf32>
    %cst_5 = arith.constant 0.000000e+00 : f32
    %6 = vector.broadcast %cst_5 : f32 to vector<128x32xf32>
    %7 = arith.cmpf ogt, %5, %6 : vector<128x32xf32>
    %cst_6 = arith.constant 0.00999999977 : f32
    %8 = vector.broadcast %cst_6 : f32 to vector<128x32xf32>
    %9 = arith.mulf %8, %5 : vector<128x32xf32>
    %10 = arith.select %7, %5, %9 : vector<128x32xi1>, vector<128x32xf32>
    %11 = arith.truncf %10 : vector<128x32xf32> to vector<128x32xbf16>
    %c0_7 = arith.constant 0 : index
    %c0_8 = arith.constant 0 : index
    %12 = vector.load %arg4[%c0_7, %c0_8] : memref<32x32xbf16, #tpu.memory_space<vmem>>, vector<32x32xbf16>
    %cst_9 = arith.constant dense<0.000000e+00> : vector<128x32xf32>
    %13 = tpu.matmul %11, %12, %cst_9 {dimension_numbers = #tpu.dot_dimension_numbers<[1], [0], [0], [1], [0, 0, 1, 1], [], []>} : vector<128x32xbf16>, vector<32x32xbf16>, vector<128x32xf32> -> vector<128x32xf32>
    %c0_10 = arith.constant 0 : index
    %c0_11 = arith.constant 0 : index
    %14 = vector.load %arg5[%c0_10, %c0_11] : memref<1x32xf32, #tpu.memory_space<vmem>>, vector<1x32xf32>
    %15 = vector.broadcast %14 : vector<1x32xf32> to vector<128x32xf32>
    %16 = arith.addf %13, %15 : vector<128x32xf32>
    %cst_12 = arith.constant 0.000000e+00 : f32
    %17 = vector.broadcast %cst_12 : f32 to vector<128x32xf32>
    %18 = arith.cmpf ogt, %16, %17 : vector<128x32xf32>
    %cst_13 = arith.constant 0.00999999977 : f32
    %19 = vector.broadcast %cst_13 : f32 to vector<128x32xf32>
    %20 = arith.mulf %19, %16 : vector<128x32xf32>
    %21 = arith.select %18, %16, %20 : vector<128x32xi1>, vector<128x32xf32>
    %22 = arith.truncf %21 : vector<128x32xf32> to vector<128x32xbf16>
    %c0_14 = arith.constant 0 : index
    %c0_15 = arith.constant 0 : index
    %23 = vector.load %arg6[%c0_14, %c0_15] : memref<32x32xbf16, #tpu.memory_space<vmem>>, vector<32x32xbf16>
    %cst_16 = arith.constant dense<0.000000e+00> : vector<128x32xf32>
    %24 = tpu.matmul %22, %23, %cst_16 {dimension_numbers = #tpu.dot_dimension_numbers<[1], [0], [0], [1], [0, 0, 1, 1], [], []>} : vector<128x32xbf16>, vector<32x32xbf16>, vector<128x32xf32> -> vector<128x32xf32>
    %c0_17 = arith.constant 0 : index
    %c0_18 = arith.constant 0 : index
    %25 = vector.load %arg7[%c0_17, %c0_18] : memref<1x32xf32, #tpu.memory_space<vmem>>, vector<1x32xf32>
    %26 = vector.broadcast %25 : vector<1x32xf32> to vector<128x32xf32>
    %27 = arith.addf %24, %26 : vector<128x32xf32>
    %cst_19 = arith.constant 0.000000e+00 : f32
    %28 = vector.broadcast %cst_19 : f32 to vector<128x32xf32>
    %29 = arith.cmpf ogt, %27, %28 : vector<128x32xf32>
    %cst_20 = arith.constant 0.00999999977 : f32
    %30 = vector.broadcast %cst_20 : f32 to vector<128x32xf32>
    %31 = arith.mulf %30, %27 : vector<128x32xf32>
    %32 = arith.select %29, %27, %31 : vector<128x32xi1>, vector<128x32xf32>
    %c0_21 = arith.constant 0 : index
    %c0_22 = arith.constant 0 : index
    %33 = vector.load %arg8[%c0_21, %c0_22] : memref<1x32xf32, #tpu.memory_space<vmem>>, vector<1x32xf32>
    %34 = vector.broadcast %33 : vector<1x32xf32> to vector<128x32xf32>
    %35 = arith.mulf %32, %34 : vector<128x32xf32>
    %cst_23 = arith.constant dense<0.000000e+00> : vector<128xf32>
    %36 = vector.multi_reduction <add>, %35, %cst_23 [1] : vector<128x32xf32> to vector<128xf32>
    %37 = vector.shape_cast %36 : vector<128xf32> to vector<128x1xf32>
    %c0_24 = arith.constant 0 : index
    %c0_25 = arith.constant 0 : index
    %38 = memref.load %arg9[%c0_24, %c0_25] : memref<1x1xf32, #tpu.memory_space<smem>>
    %39 = vector.broadcast %38 : f32 to vector<128x1xf32>
    %40 = arith.addf %37, %39 : vector<128x1xf32>
    %41 = arith.negf %40 : vector<128x1xf32>
    %42 = math.exp %41 : vector<128x1xf32>
    %cst_26 = arith.constant 1.000000e+00 : f32
    %43 = vector.broadcast %cst_26 : f32 to vector<128x1xf32>
    %44 = arith.addf %43, %42 : vector<128x1xf32>
    %45 = arith.divf %43, %44 : vector<128x1xf32>
    %c0_27 = arith.constant 0 : index
    %c0_28 = arith.constant 0 : index
    %46 = vector.load %arg10[%c0_27, %c0_28] : memref<128x1xf32, #tpu.memory_space<vmem>>, vector<128x1xf32>
    tpu.vector_store %arg10[%c0_27, %c0_28], %45 {strides = array<i32>} : memref<128x1xf32, #tpu.memory_space<vmem>>, vector<128x1xf32>,
    return
  }
  func.func @transform_0(%arg0: i32) -> (i32, i32) {
    %c0_i32 = arith.constant 0 : i32
    %c0_i32_0 = arith.constant 0 : i32
    return %arg0, %c0_i32 : i32, i32
  }
  func.func @transform_1(%arg0: i32) -> (i32, i32) {
    %c0_i32 = arith.constant 0 : i32
    %c0_i32_0 = arith.constant 0 : i32
    %c0_i32_1 = arith.constant 0 : i32
    return %c0_i32, %c0_i32_0 : i32, i32
  }
  func.func @transform_2(%arg0: i32) -> (i32, i32) {
    %c0_i32 = arith.constant 0 : i32
    %c0_i32_0 = arith.constant 0 : i32
    %c0_i32_1 = arith.constant 0 : i32
    return %c0_i32, %c0_i32_0 : i32, i32
  }
  func.func @transform_3(%arg0: i32) -> (i32, i32) {
    %c0_i32 = arith.constant 0 : i32
    %c0_i32_0 = arith.constant 0 : i32
    %c0_i32_1 = arith.constant 0 : i32
    return %c0_i32, %c0_i32_0 : i32, i32
  }
  func.func @transform_4(%arg0: i32) -> (i32, i32) {
    %c0_i32 = arith.constant 0 : i32
    %c0_i32_0 = arith.constant 0 : i32
    %c0_i32_1 = arith.constant 0 : i32
    return %c0_i32, %c0_i32_0 : i32, i32
  }
  func.func @transform_5(%arg0: i32) -> (i32, i32) {
    %c0_i32 = arith.constant 0 : i32
    %c0_i32_0 = arith.constant 0 : i32
    %c0_i32_1 = arith.constant 0 : i32
    return %c0_i32, %c0_i32_0 : i32, i32
  }
  func.func @transform_6(%arg0: i32) -> (i32, i32) {
    %c0_i32 = arith.constant 0 : i32
    %c0_i32_0 = arith.constant 0 : i32
    %c0_i32_1 = arith.constant 0 : i32
    return %c0_i32, %c0_i32_0 : i32, i32
  }
  func.func @transform_7(%arg0: i32) -> (i32, i32) {
    %c0_i32 = arith.constant 0 : i32
    %c0_i32_0 = arith.constant 0 : i32
    %c0_i32_1 = arith.constant 0 : i32
    return %c0_i32, %c0_i32_0 : i32, i32
  }
  func.func @transform_8(%arg0: i32) -> (i32, i32) {
    %c0_i32 = arith.constant 0 : i32
    %c0_i32_0 = arith.constant 0 : i32
    %c0_i32_1 = arith.constant 0 : i32
    return %c0_i32, %c0_i32_0 : i32, i32
  }
  func.func @transform_9(%arg0: i32) -> (i32, i32) {
    %c0_i32 = arith.constant 0 : i32
    %c0_i32_0 = arith.constant 0 : i32
    return %arg0, %c0_i32 : i32, i32
  }
}

</mosaic_0001>

<bundles_post_ra>
// kernel: discriminator_forward.1
= control target key start
LH: loop header
LB: loop body
LE: loop exit
PB: predicated region body
PF: predicated region fallthrough
CT: control target
= control target key end

     0   :  { %s1555_s11 = smov 0   ;;  %s1771_s0 = inlined_call_operand.vmem [shape: bf16[256,32], index: 0, kind: input, shape index: {}]   ;;  %s1772_s1 = inlined_call_operand.vmem [shape: bf16[32,32], index: 1, kind: input, shape index: {}]   ;;  %s1773_s2 = inlined_call_operand.vmem [shape: f32[1,32], index: 2, kind: input, shape index: {}]   ;;  %s1774_s3 = inlined_call_operand.vmem [shape: bf16[32,32], index: 3, kind: input, shape index: {}]   ;;  %s1775_s4 = inlined_call_operand.vmem [shape: f32[1,32], index: 4, kind: input, shape index: {}]   ;;  %s1776_s5 = inlined_call_operand.vmem [shape: bf16[32,32], index: 5, kind: input, shape index: {}]   ;;  %s1777_s6 = inlined_call_operand.vmem [shape: f32[1,32], index: 6, kind: input, shape index: {}]   ;;  %s1778_s7 = inlined_call_operand.vmem [shape: f32[1,32], index: 7, kind: input, shape index: {}]   ;;  %s1779_s8 = inlined_call_operand.<no memory space> [shape: f32[1,1], index: 8, kind: input, shape index: {}]   ;;  %s1780_s9 = inlined_call_operand.vmem [shape: f32[256,1], index: 9, kind: output, shape index: {}]  }
   0x1   :  { %14 = sst [smem:[#allocation2]] %s1779_s8 }
   0x2 LB: > { %s1245_s12 = sadd.s32 4294967295, %s1500_s11   ;;  %p1249_p0 = scmp.ge.s32.totalorder %s1500_s11, 1  ;;  %s1500_s11 = sphi %s1555_s11, %s20_s11  }
   0x3   : > { %p289_p1 = scmp.lt.s32.totalorder %s1500_s11, 3 }
   0x5   : > { %p290_p2 = pnand %p1249_p0, %p289_p1 }
   0x6   : > { %s1250_s8 = sshll.u32 (!%p290_p2), %s1245_s12, 4  ;;  %s1058_s17 = sld [smem:[#allocation2]] (!%p290_p2) }
   0x7   : > { %293 = sbr.rel (%p290_p2) target bundleno = 843 (0x34b), region = 56  ;;  %p326_p3 = scmp.lt.s32.totalorder (!%p290_p2), %s1250_s8, 31 }
   0xc   : > { %v1416_v0 = vld [vmem:[%s1772_s1 + $0x8] sm:$0xff]   ;;  %v1417_v1 = vld [vmem:[%s1772_s1] sm:$0xff]   ;;  %s1782_s8 = smov (!%p326_p3, %s1250_s8), 31  ;;  %vm417_vm0 = vcmask 261120  }
   0xd   : > { %1344 = vmatprep.subr.bf16.mxu0 %v1416_v0  ;;  %1404 = vmatprep.subr.bf16.mxu1 %v1416_v0  ;;  %v1426_v2 = vld [vmem:[%s1774_s3 + $0x8] sm:$0xff]   ;;  %s1251_s19 = sshll.u32 %s1782_s8, 2  ;;  %v1427_v11 = vld [vmem:[%s1774_s3] sm:$0xff]   ;;  %s1253_s18 = sshll.u32 %s1782_s8, 3 }
   0xe   : > { %1345 = vmatpush3.bf16.msra.mxu0 %v1416_v0  ;;  %1406 = vmatpush3.bf16.msra.mxu1 %v1416_v0  ;;  %s329_s22 = scalar_lea.vmem %s1771_s0, %s1251_s19  ;;  %v1428_v12 = vld [vmem:[%s1776_s5 + $0x8] sm:$0xff]   ;;  %v1595_v14 = vld [vmem:[%s1773_s2] ss:$0 sm:$0xff]  ;;  %s1733_s21 = scalar_lea.vmem %s1780_s9, %s1253_s18 }
   0xf   : > { %1346 = vmatprep.subr.bf16.mxu0 %v1417_v1  ;;  %1405 = vmatprep.subr.bf16.mxu1 %v1417_v1  ;;  %v1418_v3 = vld [vmem:[%s329_s22] sm:$0xff]   ;;  %v1419_v4 = vld [vmem:[%s329_s22 + $0x8] sm:$0xff]   ;;  %v1420_v5 = vld [vmem:[%s329_s22 + $0x10] sm:$0xff]  }
  0x10   : > { %1348 = vmatprep.mubr.msk.bf16.mxu0 %vm417_vm0, %v1418_v3  ;;  %v1421_v6 = vld [vmem:[%s329_s22 + $0x20] sm:$0xff]   ;;  %v1423_v7 = vld [vmem:[%s329_s22 + $0x28] sm:$0xff]   ;;  %v1424_v8 = vld [vmem:[%s329_s22 + $0x30] sm:$0xff]  }
  0x11   : > { %1356 = vmatprep.mubr.msk.bf16.mxu1 %vm417_vm0, %v1421_v6  ;;  %v1422_v9 = vld [vmem:[%s329_s22 + $0x18] sm:$0xff]  }
  0x12   : > { %1347 = vmatpush3.bf16.msra.mxu0 %v1417_v1  ;;  %1407 = vmatpush3.bf16.msra.mxu1 %v1417_v1  ;;  %v1425_v10 = vld [vmem:[%s329_s22 + $0x38] sm:$0xff]  }
  0x13   : > { %1364 = vmatprep.subr.bf16.mxu1 %v1426_v2  ;;  %1384 = vmatprep.subr.bf16.mxu0 %v1428_v12 }
  0x15   : > { %1349 = vmatmul.mubr.msk.bf16.vlgmr.msra.gmra.mxu0 %vm417_vm0, %v1419_v4  ;;  %1357 = vmatmul.mubr.msk.bf16.vlgmr.msra.gmra.mxu1 %vm417_vm0, %v1423_v7 }
  0x16   : > { %1352 = vmatprep.mubr.msk.bf16.mxu0 %vm417_vm0, %v1420_v5  ;;  %1360 = vmatprep.mubr.msk.bf16.mxu1 %vm417_vm0, %v1424_v8 }
  0x17   : > { %1365 = vmatpush3.bf16.msra.mxu1 %v1426_v2  ;;  %1385 = vmatpush3.bf16.msra.mxu0 %v1428_v12 }
  0x18   : > { %1366 = vmatprep.subr.bf16.mxu1 %v1427_v11 }
  0x1b   : > { %1367 = vmatpush3.bf16.msra.mxu1 %v1427_v11 }
  0x1d   : > { %1353 = vmatmul.mubr.msk.bf16.gmra.mxu0 %vm417_vm0, %v1422_v9  ;;  %1361 = vmatmul.mubr.msk.bf16.gmra.mxu1 %vm417_vm0, %v1425_v10 }
  0xd5   : > { %v1350_v13 = vpop.f32.mrf.mxu0  ;;  %v1358_v19 = vpop.f32.mrf.mxu1 }
  0xd6   : > { %v485_v17 = vadd.f32 %v1350_v13, %v1595_v14  ;;  %v517_v55 = vadd.f32 %v1358_v19, %v1595_v14 }
  0xd7   : > { %v476_v15 = vpop.f32.mrf.mxu0  ;;  %v508_v22 = vpop.f32.mrf.mxu1 }
  0xd8   : > { %v477_v16 = vadd.f32 %v1595_v14, %v476_v15  ;;  %v557_v26 = vmul.f32 0.01, %v485_v17  ;;  %vm541_vm3 = vcmp.gt.f32.partialorder %v485_v17, 0.0  ;;  %v509_v32 = vadd.f32 %v1595_v14, %v508_v22 }
  0xd9   : > { %v1351_v18 = vpop.f32.mrf.mxu0  ;;  %v1359_v28 = vpop.f32.mrf.mxu1  ;;  %v565_v4 = vmul.f32 0.01, %v517_v55  ;;  %vm549_vm11 = vcmp.gt.f32.partialorder %v517_v55, 0.0 }
  0xda   : > { %v488_v20 = vadd.f32 %v1351_v18, %v1595_v14  ;;  %v555_v23 = vmul.f32 0.01, %v477_v16  ;;  %vm539_vm2 = vcmp.gt.f32.partialorder %v477_v16, 0.0  ;;  %v573_v37 = vsel %vm541_vm3, %v485_v17, %v557_v26 }
  0xdb   : > { %v479_v21 = vpop.f32.mrf.mxu0  ;;  %v511_v33 = vpop.f32.mrf.mxu1  ;;  %vm547_vm5 = vcmp.gt.f32.partialorder %v509_v32, 0.0  ;;  %v563_v46 = vmul.f32 0.01, %v509_v32  ;;  %v520_v58 = vadd.f32 %v1359_v28, %v1595_v14  ;;  %v581_v9 = vsel %vm549_vm11, %v517_v55, %v565_v4 }
  0xdc   : > { %vm542_vm1 = vcmp.gt.f32.partialorder %v488_v20, 0.0  ;;  %v558_v24 = vmul.f32 0.01, %v488_v20  ;;  %v480_v25 = vadd.f32 %v1595_v14, %v479_v21  ;;  %v571_v34 = vsel %vm539_vm2, %v477_v16, %v555_v23 }
  0xdd   : > { %v1354_v27 = vpop.f32.mrf.mxu0  ;;  %v512_v41 = vadd.f32 %v1595_v14, %v511_v33  ;;  %v1362_v42 = vpop.f32.mrf.mxu1  ;;  %v579_v56 = vsel %vm547_vm5, %v509_v32, %v563_v46  ;;  %v566_v5 = vmul.f32 0.01, %v520_v58  ;;  %vm550_vm12 = vcmp.gt.f32.partialorder %v520_v58, 0.0 }
  0xde   : > { %vm540_vm4 = vcmp.gt.f32.partialorder %v480_v25, 0.0  ;;  %v556_v29 = vmul.f32 0.01, %v480_v25  ;;  %v574_v30 = vsel %vm542_vm1, %v488_v20, %v558_v24  ;;  %v501_v39 = vadd.f32 %v1354_v27, %v1595_v14  ;;  %v1628_v24 = vld [vmem:[%s1775_s4] ss:$0 sm:$0xff] }
  0xdf   : > { %v492_v31 = vpop.f32.mrf.mxu0  ;;  %v588_v43 = vpack.c.bf16 %v574_v30, %v573_v37  ;;  %v524_v48 = vpop.f32.mrf.mxu1  ;;  %v564_v51 = vmul.f32 0.01, %v512_v41  ;;  %vm548_vm8 = vcmp.gt.f32.partialorder %v512_v41, 0.0  ;;  %v582_v10 = vsel %vm550_vm12, %v520_v58, %v566_v5 }
  0xe0   : > { %v572_v35 = vsel %vm540_vm4, %v480_v25, %v556_v29  ;;  %v493_v36 = vadd.f32 %v1595_v14, %v492_v31  ;;  %v561_v52 = vmul.f32 0.01, %v501_v39  ;;  %vm545_vm9 = vcmp.gt.f32.partialorder %v501_v39, 0.0 }
  0xe1   : > { %v587_v38 = vpack.c.bf16 %v572_v35, %v571_v34  ;;  %v1355_v40 = vpop.f32.mrf.mxu0  ;;  %v1363_v53 = vpop.f32.mrf.mxu1  ;;  %v580_v62 = vsel %vm548_vm8, %v512_v41, %v564_v51  ;;  %v525_v63 = vadd.f32 %v1595_v14, %v524_v48  ;;  %v533_v11 = vadd.f32 %v1362_v42, %v1595_v14 }
  0xe2   : > { %v504_v44 = vadd.f32 %v1355_v40, %v1595_v14  ;;  %v559_v45 = vmul.f32 0.01, %v493_v36  ;;  %vm543_vm7 = vcmp.gt.f32.partialorder %v493_v36, 0.0  ;;  %v577_v0 = vsel %vm545_vm9, %v501_v39, %v561_v52 }
  0xe3   : > { %v495_v47 = vpop.f32.mrf.mxu0  ;;  %1368 = vmatprep.mubr.msk.bf16.mxu1 %vm417_vm0, %v587_v38  ;;  %v527_v59 = vpop.f32.mrf.mxu1  ;;  %v591_v6 = vpack.c.bf16 %v580_v62, %v579_v56  ;;  %v567_v7 = vmul.f32 0.01, %v525_v63  ;;  %vm551_vm13 = vcmp.gt.f32.partialorder %v525_v63, 0.0  ;;  %v536_v12 = vadd.f32 %v1363_v53, %v1595_v14 }
  0xe4   : > { %vm546_vm6 = vcmp.gt.f32.partialorder %v504_v44, 0.0  ;;  %v562_v49 = vmul.f32 0.01, %v504_v44  ;;  %v496_v50 = vadd.f32 %v1595_v14, %v495_v47  ;;  %1369 = vmatmul.mubr.msk.bf16.vlgmr.msra.gmra.mxu1 %vm417_vm0, %v588_v43  ;;  %v575_v60 = vsel %vm543_vm7, %v493_v36, %v559_v45 }
  0xe5   : > { %v528_v2 = vadd.f32 %v1595_v14, %v527_v59  ;;  %v583_v13 = vsel %vm551_vm13, %v525_v63, %v567_v7  ;;  %v592_v16 = vpack.c.bf16 %v582_v10, %v581_v9  ;;  %v569_v17 = vmul.f32 0.01, %v533_v11  ;;  %v1429_v14 = vld [vmem:[%s1776_s5] sm:$0xff]  }
  0xe6   : > { %vm544_vm10 = vcmp.gt.f32.partialorder %v496_v50, 0.0  ;;  %v560_v54 = vmul.f32 0.01, %v496_v50  ;;  %v578_v57 = vsel %vm546_vm6, %v504_v44, %v562_v49  ;;  %v570_v18 = vmul.f32 0.01, %v536_v12  ;;  %1386 = vmatprep.subr.bf16.mxu0 %v1429_v14 }
  0xe7   : > { %v590_v3 = vpack.c.bf16 %v578_v57, %v577_v0  ;;  %v568_v8 = vmul.f32 0.01, %v528_v2  ;;  %vm552_vm14 = vcmp.gt.f32.partialorder %v528_v2, 0.0  ;;  %vm553_vm15 = vcmp.gt.f32.partialorder %v533_v11, 0.0  ;;  %1387 = vmatpush3.bf16.msra.mxu0 %v1429_v14 }
  0xe8   : > { %v576_v61 = vsel %vm544_vm10, %v496_v50, %v560_v54  ;;  %vm554_vm1 = vcmp.gt.f32.partialorder %v536_v12, 0.0  ;;  %v585_v20 = vsel %vm553_vm15, %v533_v11, %v569_v17 }
  0xe9   : > { %v589_v1 = vpack.c.bf16 %v576_v61, %v575_v60  ;;  %v584_v15 = vsel %vm552_vm14, %v528_v2, %v568_v8  ;;  %v586_v21 = vsel %vm554_vm1, %v536_v12, %v570_v18 }
  0xea   : > { %v593_v19 = vpack.c.bf16 %v584_v15, %v583_v13  ;;  %v594_v22 = vpack.c.bf16 %v586_v21, %v585_v20 }
  0xeb   : > { %1372 = vmatprep.mubr.msk.bf16.mxu1 %vm417_vm0, %v589_v1 }
  0xec   : > { %1373 = vmatmul.mubr.msk.bf16.gmra.mxu1 %vm417_vm0, %v590_v3 }
  0xed   : > { %1376 = vmatprep.mubr.msk.bf16.mxu1 %vm417_vm0, %v591_v6 }
  0xf4   : > { %1377 = vmatmul.mubr.msk.bf16.gmra.mxu1 %vm417_vm0, %v592_v16 }
  0xf5   : > { %1380 = vmatprep.mubr.msk.bf16.mxu1 %vm417_vm0, %v593_v19 }
  0xfc   : > { %1381 = vmatmul.mubr.msk.bf16.gmra.mxu1 %vm417_vm0, %v594_v22 }
 0x1a4   : > { %v1370_v23 = vpop.f32.mrf.mxu1 }
 0x1a5   : > { %v685_v27 = vadd.f32 %v1370_v23, %v1628_v24 }
 0x1a6   : > { %v676_v25 = vpop.f32.mrf.mxu1 }
 0x1a7   : > { %v677_v26 = vadd.f32 %v1628_v24, %v676_v25  ;;  %v757_v34 = vmul.f32 0.01, %v685_v27  ;;  %vm741_vm4 = vcmp.gt.f32.partialorder %v685_v27, 0.0 }
 0x1a8   : > { %v1371_v28 = vpop.f32.mrf.mxu1 }
 0x1a9   : > { %v688_v29 = vadd.f32 %v1371_v28, %v1628_v24  ;;  %v755_v31 = vmul.f32 0.01, %v677_v26  ;;  %vm739_vm3 = vcmp.gt.f32.partialorder %v677_v26, 0.0  ;;  %v773_v42 = vsel %vm741_vm4, %v685_v27, %v757_v34 }
 0x1aa   : > { %v679_v30 = vpop.f32.mrf.mxu1 }
 0x1ab   : > { %vm742_vm2 = vcmp.gt.f32.partialorder %v688_v29, 0.0  ;;  %v758_v32 = vmul.f32 0.01, %v688_v29  ;;  %v680_v33 = vadd.f32 %v1628_v24, %v679_v30  ;;  %v771_v39 = vsel %vm739_vm3, %v677_v26, %v755_v31 }
 0x1ac   : > { %v1374_v35 = vpop.f32.mrf.mxu1 }
 0x1ad   : > { %vm740_vm5 = vcmp.gt.f32.partialorder %v680_v33, 0.0  ;;  %v756_v36 = vmul.f32 0.01, %v680_v33  ;;  %v774_v37 = vsel %vm742_vm2, %v688_v29, %v758_v32  ;;  %v701_v44 = vadd.f32 %v1374_v35, %v1628_v24 }
 0x1ae   : > { %v692_v38 = vpop.f32.mrf.mxu1  ;;  %v788_v46 = vpack.c.bf16 %v774_v37, %v773_v42 }
 0x1af   : > { %v772_v40 = vsel %vm740_vm5, %v680_v33, %v756_v36  ;;  %v693_v41 = vadd.f32 %v1628_v24, %v692_v38  ;;  %v761_v52 = vmul.f32 0.01, %v701_v44  ;;  %vm745_vm8 = vcmp.gt.f32.partialorder %v701_v44, 0.0  ;;  %v1664_v38 = vld [vmem:[%s1778_s7] ss:$0 sm:$0xff] }
 0x1b0   : > { %v787_v43 = vpack.c.bf16 %v772_v40, %v771_v39  ;;  %v1375_v45 = vpop.f32.mrf.mxu1 }
 0x1b1   : > { %v704_v47 = vadd.f32 %v1375_v45, %v1628_v24  ;;  %v759_v49 = vmul.f32 0.01, %v693_v41  ;;  %vm743_vm7 = vcmp.gt.f32.partialorder %v693_v41, 0.0  ;;  %v777_v60 = vsel %vm745_vm8, %v701_v44, %v761_v52 }
 0x1b2   : > { %v695_v48 = vpop.f32.mrf.mxu1  ;;  %1388 = vmatprep.mubr.msk.bf16.mxu0 %vm417_vm0, %v787_v43 }
 0x1b3   : > { %vm746_vm6 = vcmp.gt.f32.partialorder %v704_v47, 0.0  ;;  %v762_v50 = vmul.f32 0.01, %v704_v47  ;;  %v696_v51 = vadd.f32 %v1628_v24, %v695_v48  ;;  %1389 = vmatmul.mubr.msk.bf16.vlgmr.msra.gmra.mxu0 %vm417_vm0, %v788_v46  ;;  %v775_v57 = vsel %vm743_vm7, %v693_v41, %v759_v49 }
 0x1b4   : > { %v1378_v53 = vpop.f32.mrf.mxu1 }
 0x1b5   : > { %vm744_vm9 = vcmp.gt.f32.partialorder %v696_v51, 0.0  ;;  %v760_v54 = vmul.f32 0.01, %v696_v51  ;;  %v778_v55 = vsel %vm746_vm6, %v704_v47, %v762_v50  ;;  %v717_v62 = vadd.f32 %v1378_v53, %v1628_v24 }
 0x1b6   : > { %v708_v56 = vpop.f32.mrf.mxu1  ;;  %v790_v0 = vpack.c.bf16 %v778_v55, %v777_v60 }
 0x1b7   : > { %v776_v58 = vsel %vm744_vm9, %v696_v51, %v760_v54  ;;  %v709_v59 = vadd.f32 %v1628_v24, %v708_v56  ;;  %v765_v6 = vmul.f32 0.01, %v717_v62  ;;  %vm749_vm12 = vcmp.gt.f32.partialorder %v717_v62, 0.0 }
 0x1b8   : > { %v789_v61 = vpack.c.bf16 %v776_v58, %v775_v57  ;;  %v1379_v63 = vpop.f32.mrf.mxu1 }
 0x1b9   : > { %v720_v1 = vadd.f32 %v1379_v63, %v1628_v24  ;;  %v763_v3 = vmul.f32 0.01, %v709_v59  ;;  %vm747_vm11 = vcmp.gt.f32.partialorder %v709_v59, 0.0  ;;  %v781_v15 = vsel %vm749_vm12, %v717_v62, %v765_v6 }
 0x1ba   : > { %v711_v2 = vpop.f32.mrf.mxu1  ;;  %1392 = vmatprep.mubr.msk.bf16.mxu0 %vm417_vm0, %v789_v61 }
 0x1bb   : > { %vm750_vm10 = vcmp.gt.f32.partialorder %v720_v1, 0.0  ;;  %v766_v4 = vmul.f32 0.01, %v720_v1  ;;  %v712_v5 = vadd.f32 %v1628_v24, %v711_v2  ;;  %1393 = vmatmul.mubr.msk.bf16.gmra.mxu0 %vm417_vm0, %v790_v0  ;;  %v779_v11 = vsel %vm747_vm11, %v709_v59, %v763_v3 }
 0x1bc   : > { %v1382_v7 = vpop.f32.mrf.mxu1 }
 0x1bd   : > { %vm748_vm13 = vcmp.gt.f32.partialorder %v712_v5, 0.0  ;;  %v764_v8 = vmul.f32 0.01, %v712_v5  ;;  %v782_v9 = vsel %vm750_vm10, %v720_v1, %v766_v4  ;;  %v733_v17 = vadd.f32 %v1382_v7, %v1628_v24 }
 0x1be   : > { %v724_v10 = vpop.f32.mrf.mxu1  ;;  %v792_v19 = vpack.c.bf16 %v782_v9, %v781_v15 }
 0x1bf   : > { %v780_v12 = vsel %vm748_vm13, %v712_v5, %v764_v8  ;;  %v725_v13 = vadd.f32 %v1628_v24, %v724_v10  ;;  %v769_v25 = vmul.f32 0.01, %v733_v17  ;;  %vm753_vm1 = vcmp.gt.f32.partialorder %v733_v17, 0.0 }
 0x1c0   : > { %v791_v16 = vpack.c.bf16 %v780_v12, %v779_v11  ;;  %v1383_v18 = vpop.f32.mrf.mxu1 }
 0x1c1   : > { %v736_v20 = vadd.f32 %v1383_v18, %v1628_v24  ;;  %v767_v22 = vmul.f32 0.01, %v725_v13  ;;  %vm751_vm15 = vcmp.gt.f32.partialorder %v725_v13, 0.0  ;;  %v785_v30 = vsel %vm753_vm1, %v733_v17, %v769_v25 }
 0x1c2   : > { %v727_v21 = vpop.f32.mrf.mxu1  ;;  %1396 = vmatprep.mubr.msk.bf16.mxu0 %vm417_vm0, %v791_v16 }
 0x1c3   : > { %vm754_vm14 = vcmp.gt.f32.partialorder %v736_v20, 0.0  ;;  %v770_v14 = vmul.f32 0.01, %v736_v20  ;;  %v728_v23 = vadd.f32 %v1628_v24, %v727_v21  ;;  %1397 = vmatmul.mubr.msk.bf16.gmra.mxu0 %vm417_vm0, %v792_v19  ;;  %v783_v28 = vsel %vm751_vm15, %v725_v13, %v767_v22  ;;  %v1657_v24 = vld [vmem:[%s1777_s6] ss:$0 sm:$0xff] }
 0x1c5   : > { %vm752_vm2 = vcmp.gt.f32.partialorder %v728_v23, 0.0  ;;  %v768_v26 = vmul.f32 0.01, %v728_v23  ;;  %v786_v27 = vsel %vm754_vm14, %v736_v20, %v770_v14 }
 0x1c6   : > { %v794_v32 = vpack.c.bf16 %v786_v27, %v785_v30 }
 0x1c7   : > { %v784_v29 = vsel %vm752_vm2, %v728_v23, %v768_v26 }
 0x1c8   : > { %v793_v31 = vpack.c.bf16 %v784_v29, %v783_v28 }
 0x1ca   : > { %1400 = vmatprep.mubr.msk.bf16.mxu0 %vm417_vm0, %v793_v31 }
 0x1cb   : > { %1401 = vmatmul.mubr.msk.bf16.gmra.mxu0 %vm417_vm0, %v794_v32 }
 0x273   : > { %v1390_v33 = vpop.f32.mrf.mxu0 }
 0x274   : > { %v885_v34 = vadd.f32 %v1390_v33, %v1657_v24 }
 0x275   : > { %v876_v35 = vpop.f32.mrf.mxu0 }
 0x276   : > { %v957_v36 = vmul.f32 0.01, %v885_v34  ;;  %v877_v37 = vadd.f32 %v1657_v24, %v876_v35  ;;  %vm941_vm3 = vcmp.gt.f32.partialorder %v885_v34, 0.0 }
 0x277   : > { %v1391_v39 = vpop.f32.mrf.mxu0 }
 0x278   : > { %v955_v40 = vmul.f32 0.01, %v877_v37  ;;  %v888_v41 = vadd.f32 %v1391_v39, %v1657_v24  ;;  %v973_v42 = vsel %vm941_vm3, %v885_v34, %v957_v36  ;;  %vm939_vm4 = vcmp.gt.f32.partialorder %v877_v37, 0.0 }
 0x279   : > { %v879_v43 = vpop.f32.mrf.mxu0  ;;  %v996_v44 = vmul.f32 %v1664_v38, %v973_v42 }
 0x27a   : > { %vm942_vm5 = vcmp.gt.f32.partialorder %v888_v41, 0.0  ;;  %v958_v45 = vmul.f32 0.01, %v888_v41  ;;  %v880_v46 = vadd.f32 %v1657_v24, %v879_v43  ;;  %v971_v47 = vsel %vm939_vm4, %v877_v37, %v955_v40 }
 0x27b   : > { %v1394_v48 = vpop.f32.mrf.mxu0  ;;  %v1016_v49 = vsel %vm417_vm0, %v996_v44, 0.0  ;;  %v994_v50 = vmul.f32 %v1664_v38, %v971_v47 }
 0x27c   : > { %vm940_vm6 = vcmp.gt.f32.partialorder %v880_v46, 0.0  ;;  %v956_v51 = vmul.f32 0.01, %v880_v46  ;;  %v901_v52 = vadd.f32 %v1394_v48, %v1657_v24  ;;  %1017 = vadd.xlane.f32.xlu1 %v1016_v49  ;;  %v974_v53 = vsel %vm942_vm5, %v888_v41, %v958_v45 }
 0x27d   : > { %v892_v54 = vpop.f32.mrf.mxu0  ;;  %v1010_v55 = vsel %vm417_vm0, %v994_v50, 0.0  ;;  %v997_v56 = vmul.f32 %v1664_v38, %v974_v53 }
 0x27e   : > { %vm945_vm7 = vcmp.gt.f32.partialorder %v901_v52, 0.0  ;;  %v961_v57 = vmul.f32 0.01, %v901_v52  ;;  %v893_v58 = vadd.f32 %v1657_v24, %v892_v54  ;;  %1011 = vadd.xlane.f32.xlu0 %v1010_v55  ;;  %v972_v59 = vsel %vm940_vm6, %v880_v46, %v956_v51 }
 0x27f   : > { %v1395_v60 = vpop.f32.mrf.mxu0  ;;  %v1019_v61 = vsel %vm417_vm0, %v997_v56, 0.0  ;;  %v995_v62 = vmul.f32 %v1664_v38, %v972_v59 }
 0x280   : > { %vm943_vm8 = vcmp.gt.f32.partialorder %v893_v58, 0.0  ;;  %v959_v63 = vmul.f32 0.01, %v893_v58  ;;  %v904_v0 = vadd.f32 %v1395_v60, %v1657_v24  ;;  %1020 = vadd.xlane.f32.xlu1 %v1019_v61  ;;  %v977_v1 = vsel %vm945_vm7, %v901_v52, %v961_v57 }
 0x281   : > { %v895_v2 = vpop.f32.mrf.mxu0  ;;  %v1013_v3 = vsel %vm417_vm0, %v995_v62, 0.0  ;;  %v1000_v4 = vmul.f32 %v1664_v38, %v977_v1 }
 0x282   : > { %vm946_vm9 = vcmp.gt.f32.partialorder %v904_v0, 0.0  ;;  %v962_v5 = vmul.f32 0.01, %v904_v0  ;;  %v896_v6 = vadd.f32 %v1657_v24, %v895_v2  ;;  %1014 = vadd.xlane.f32.xlu0 %v1013_v3  ;;  %v975_v7 = vsel %vm943_vm8, %v893_v58, %v959_v63 }
 0x283   : > { %v1398_v8 = vpop.f32.mrf.mxu0  ;;  %v1028_v13 = vsel %vm417_vm0, %v1000_v4, 0.0  ;;  %v998_v16 = vmul.f32 %v1664_v38, %v975_v7  ;;  %v1712_v3 = vstv %s1058_s17 }
 0x284   : > { %vm944_vm10 = vcmp.gt.f32.partialorder %v896_v6, 0.0  ;;  %v960_v9 = vmul.f32 0.01, %v896_v6  ;;  %v917_v10 = vadd.f32 %v1398_v8, %v1657_v24  ;;  %v978_v11 = vsel %vm946_vm9, %v904_v0, %v962_v5 }
 0x285   : > { %v908_v12 = vpop.f32.mrf.mxu0  ;;  %v1001_v15 = vmul.f32 %v1664_v38, %v978_v11  ;;  %v1022_v27 = vsel %vm417_vm0, %v998_v16, 0.0 }
 0x286   : > { %vm949_vm11 = vcmp.gt.f32.partialorder %v917_v10, 0.0  ;;  %v965_v17 = vmul.f32 0.01, %v917_v10  ;;  %v909_v18 = vadd.f32 %v1657_v24, %v908_v12  ;;  %1029 = vadd.xlane.f32.xlu0 %v1028_v13  ;;  %v976_v19 = vsel %vm944_vm10, %v896_v6, %v960_v9 }
 0x287   : > { %v1399_v20 = vpop.f32.mrf.mxu0  ;;  %v1031_v21 = vsel %vm417_vm0, %v1001_v15, 0.0  ;;  %v999_v22 = vmul.f32 %v1664_v38, %v976_v19 }
 0x288   : > { %vm947_vm12 = vcmp.gt.f32.partialorder %v909_v18, 0.0  ;;  %v963_v14 = vmul.f32 0.01, %v909_v18  ;;  %v920_v23 = vadd.f32 %v1399_v20, %v1657_v24  ;;  %1032 = vadd.xlane.f32.xlu1 %v1031_v21  ;;  %v981_v25 = vsel %vm949_vm11, %v917_v10, %v965_v17 }
 0x289   : > { %v911_v26 = vpop.f32.mrf.mxu0  ;;  %v1004_v28 = vmul.f32 %v1664_v38, %v981_v25  ;;  %v1025_v33 = vsel %vm417_vm0, %v999_v22, 0.0 }
 0x28a   : > { %vm950_vm13 = vcmp.gt.f32.partialorder %v920_v23, 0.0  ;;  %v966_v29 = vmul.f32 0.01, %v920_v23  ;;  %v912_v30 = vadd.f32 %v1657_v24, %v911_v26  ;;  %1023 = vadd.xlane.f32.xlu0 %v1022_v27  ;;  %v979_v31 = vsel %vm947_vm12, %v909_v18, %v963_v14 }
 0x28b   : > { %v1402_v32 = vpop.f32.mrf.mxu0  ;;  %v1040_v39 = vsel %vm417_vm0, %v1004_v28, 0.0  ;;  %v1002_v41 = vmul.f32 %v1664_v38, %v979_v31 }
 0x28c   : > { %vm948_vm14 = vcmp.gt.f32.partialorder %v912_v30, 0.0  ;;  %v964_v34 = vmul.f32 0.01, %v912_v30  ;;  %v933_v35 = vadd.f32 %v1402_v32, %v1657_v24  ;;  %1026 = vadd.xlane.f32.xlu1 %v1025_v33  ;;  %v982_v36 = vsel %vm950_vm13, %v920_v23, %v966_v29 }
 0x28d   : > { %v924_v37 = vpop.f32.mrf.mxu0  ;;  %v1005_v40 = vmul.f32 %v1664_v38, %v982_v36  ;;  %v1034_v51 = vsel %vm417_vm0, %v1002_v41, 0.0 }
 0x28e   : > { %v969_v42 = vmul.f32 0.01, %v933_v35  ;;  %v925_v43 = vadd.f32 %v1657_v24, %v924_v37  ;;  %1041 = vadd.xlane.f32.xlu0 %v1040_v39  ;;  %v980_v44 = vsel %vm948_vm14, %v912_v30, %v964_v34  ;;  %vm953_vm15 = vcmp.gt.f32.partialorder %v933_v35, 0.0 }
 0x28f   : > { %v1403_v45 = vpop.f32.mrf.mxu0  ;;  %v1043_v46 = vsel %vm417_vm0, %v1005_v40, 0.0  ;;  %v1003_v47 = vmul.f32 %v1664_v38, %v980_v44 }
 0x290   : > { %vm951_vm1 = vcmp.gt.f32.partialorder %v925_v43, 0.0  ;;  %v967_v48 = vmul.f32 0.01, %v925_v43  ;;  %v936_v49 = vadd.f32 %v1403_v45, %v1657_v24  ;;  %1044 = vadd.xlane.f32.xlu1 %v1043_v46  ;;  %v985_v55 = vsel %vm953_vm15, %v933_v35, %v969_v42 }
 0x291   : > { %v927_v50 = vpop.f32.mrf.mxu0  ;;  %v1037_v56 = vsel %vm417_vm0, %v1003_v47, 0.0  ;;  %v1008_v60 = vmul.f32 %v1664_v38, %v985_v55 }
 0x292   : > { %v970_v52 = vmul.f32 0.01, %v936_v49  ;;  %v928_v53 = vadd.f32 %v1657_v24, %v927_v50  ;;  %1035 = vadd.xlane.f32.xlu0 %v1034_v51  ;;  %v983_v54 = vsel %vm951_vm1, %v925_v43, %v967_v48  ;;  %vm954_vm2 = vcmp.gt.f32.partialorder %v936_v49, 0.0 }
 0x293   : > { %v1006_v57 = vmul.f32 %v1664_v38, %v983_v54  ;;  %v1052_v0 = vsel %vm417_vm0, %v1008_v60, 0.0 }
 0x294   : > { %vm952_vm3 = vcmp.gt.f32.partialorder %v928_v53, 0.0  ;;  %v968_v58 = vmul.f32 0.01, %v928_v53  ;;  %1038 = vadd.xlane.f32.xlu1 %v1037_v56  ;;  %v986_v62 = vsel %vm954_vm2, %v936_v49, %v970_v52 }
 0x295   : > { %v1046_v59 = vsel %vm417_vm0, %v1006_v57, 0.0  ;;  %v1009_v1 = vmul.f32 %v1664_v38, %v986_v62 }
 0x296   : > { %1047 = vadd.xlane.f32.xlu0 %v1046_v59  ;;  %v984_v61 = vsel %vm952_vm3, %v928_v53, %v968_v58 }
 0x297   : > { %v1007_v24 = vmul.f32 %v1664_v38, %v984_v61  ;;  %v1055_v2 = vsel %vm417_vm0, %v1009_v1, 0.0 }
 0x299   : > { %v1049_v63 = vsel %vm417_vm0, %v1007_v24, 0.0  ;;  %vm1172_vm0 = vcmask 7168  }
 0x29a   : > { %1050 = vadd.xlane.f32.xlu1 %v1049_v63  ;;  %1053 = vadd.xlane.f32.xlu0 %v1052_v0 }
 0x29e   : > { %1056 = vadd.xlane.f32.xlu1 %v1055_v2 }
 0x305   : > { %v1018_v4 = vpop.xlane.xlu1 %1017 }
 0x306   : > { %v1062_v5 = vadd.f32 %v1712_v3, %v1018_v4 }
 0x307   : > { %v1012_v6 = vpop.xlane.xlu0 %1011 }
 0x308   : > { %v1298_v7 = vmul.f32 -1.442695, %v1062_v5  ;;  %v1060_v8 = vadd.f32 %v1712_v3, %v1012_v6 }
 0x309   : > { %v1021_v9 = vpop.xlane.xlu1 %1020 }
 0x30a   : > { %1430 = vpow2.f32 %v1298_v7  ;;  %v1296_v10 = vmul.f32 -1.442695, %v1060_v8  ;;  %v1063_v38 = vadd.f32 %v1712_v3, %v1021_v9 }
 0x30b   : > { %v1015_v11 = vpop.xlane.xlu0 %1014 }
 0x30c   : > { %1432 = vpow2.f32 %v1296_v10  ;;  %v1299_v12 = vmul.f32 -1.442695, %v1063_v38  ;;  %v1061_v13 = vadd.f32 %v1712_v3, %v1015_v11 }
 0x30e   : > { %1434 = vpow2.f32 %v1299_v12  ;;  %v1297_v15 = vmul.f32 -1.442695, %v1061_v13 }
 0x30f   : > { %v1030_v16 = vpop.xlane.xlu0 %1029 }
 0x310   : > { %1436 = vpow2.f32 %v1297_v15  ;;  %v1066_v17 = vadd.f32 %v1712_v3, %v1030_v16 }
 0x311   : > { %v1033_v18 = vpop.xlane.xlu1 %1032 }
 0x312   : > { %v1302_v19 = vmul.f32 -1.442695, %v1066_v17  ;;  %v1067_v20 = vadd.f32 %v1712_v3, %v1033_v18 }
 0x313   : > { %v1024_v21 = vpop.xlane.xlu0 %1023 }
 0x314   : > { %1438 = vpow2.f32 %v1302_v19  ;;  %v1303_v22 = vmul.f32 -1.442695, %v1067_v20  ;;  %v1064_v14 = vadd.f32 %v1712_v3, %v1024_v21 }
 0x315   : > { %v1027_v23 = vpop.xlane.xlu1 %1026 }
 0x316   : > { %1440 = vpow2.f32 %v1303_v22  ;;  %v1300_v25 = vmul.f32 -1.442695, %v1064_v14  ;;  %v1065_v26 = vadd.f32 %v1712_v3, %v1027_v23 }
 0x317   : > { %v1431_v27 = vpop.eup %1430  ;;  %v1042_v28 = vpop.xlane.xlu0 %1041 }
 0x318   : > { %v1126_v29 = vadd.f32 1.0, %v1431_v27  ;;  %1442 = vpow2.f32 %v1300_v25  ;;  %v1301_v30 = vmul.f32 -1.442695, %v1065_v26  ;;  %v1070_v31 = vadd.f32 %v1712_v3, %v1042_v28 }
 0x319   : > { %v1433_v32 = vpop.eup %1432  ;;  %v1045_v33 = vpop.xlane.xlu1 %1044 }
 0x31a   : > { %1444 = vrcp.f32 %v1126_v29  ;;  %v1124_v34 = vadd.f32 1.0, %v1433_v32  ;;  %v1306_v35 = vmul.f32 -1.442695, %v1070_v31  ;;  %v1071_v36 = vadd.f32 %v1712_v3, %v1045_v33 }
 0x31b   : > { %v1435_v37 = vpop.eup %1434  ;;  %1446 = vpow2.f32 %v1301_v30  ;;  %v1036_v39 = vpop.xlane.xlu0 %1035 }
 0x31c   : > { %1448 = vrcp.f32 %v1124_v34  ;;  %v1127_v40 = vadd.f32 1.0, %v1435_v37  ;;  %v1307_v41 = vmul.f32 -1.442695, %v1071_v36  ;;  %v1068_v42 = vadd.f32 %v1712_v3, %v1036_v39 }
 0x31d   : > { %v1437_v43 = vpop.eup %1436  ;;  %1450 = vpow2.f32 %v1306_v35  ;;  %v1039_v44 = vpop.xlane.xlu1 %1038 }
 0x31e   : > { %1452 = vrcp.f32 %v1127_v40  ;;  %v1125_v45 = vadd.f32 1.0, %v1437_v43  ;;  %v1304_v46 = vmul.f32 -1.442695, %v1068_v42  ;;  %v1069_v47 = vadd.f32 %v1712_v3, %v1039_v44 }
 0x31f   : > { %1454 = vpow2.f32 %v1307_v41  ;;  %v1048_v48 = vpop.xlane.xlu0 %1047 }
 0x320   : > { %1456 = vrcp.f32 %v1125_v45  ;;  %v1305_v49 = vmul.f32 -1.442695, %v1069_v47  ;;  %v1072_v50 = vadd.f32 %v1712_v3, %v1048_v48 }
 0x321   : > { %v1439_v51 = vpop.eup %1438  ;;  %1458 = vpow2.f32 %v1304_v46 }
 0x322   : > { %v1130_v52 = vadd.f32 1.0, %v1439_v51  ;;  %1460 = vpow2.f32 %v1305_v49  ;;  %v1308_v53 = vmul.f32 -1.442695, %v1072_v50 }
 0x323   : > { %v1441_v54 = vpop.eup %1440  ;;  %v1051_v55 = vpop.xlane.xlu1 %1050 }
 0x324   : > { %v1054_v56 = vpop.xlane.xlu0 %1053  ;;  %1462 = vrcp.f32 %v1130_v52  ;;  %v1131_v57 = vadd.f32 1.0, %v1441_v54  ;;  %v1073_v58 = vadd.f32 %v1712_v3, %v1051_v55 }
 0x325   : > { %v1074_v59 = vadd.f32 %v1712_v3, %v1054_v56  ;;  %v1443_v60 = vpop.eup %1442  ;;  %1464 = vpow2.f32 %v1308_v53 }
 0x326   : > { %1466 = vrcp.f32 %v1131_v57  ;;  %v1128_v61 = vadd.f32 1.0, %v1443_v60  ;;  %v1309_v62 = vmul.f32 -1.442695, %v1073_v58 }
 0x327   : > { %v1310_v24 = vmul.f32 -1.442695, %v1074_v59  ;;  %v1445_v63 = vpop.eup %1444  ;;  %v1057_v0 = vpop.xlane.xlu1 %1056 }
 0x328   : > { %v1447_v1 = vpop.eup %1446  ;;  %1175 = vst.msk [vmem:[%s1733_s21 + $0x10] sm:$0xff] %vm1172_vm0, %v1445_v63  ;;  %1468 = vrcp.f32 %v1128_v61  ;;  %v1075_v2 = vadd.f32 %v1712_v3, %v1057_v0 }
 0x329   : > { %v1449_v4 = vpop.eup %1448  ;;  %v1129_v5 = vadd.f32 1.0, %v1447_v1  ;;  %1470 = vpow2.f32 %v1309_v62 }
 0x32a   : > { %v1451_v6 = vpop.eup %1450  ;;  %1173 = vst.msk [vmem:[%s1733_s21] sm:$0xff] %vm1172_vm0, %v1449_v4  ;;  %1472 = vpow2.f32 %v1310_v24  ;;  %v1311_v7 = vmul.f32 -1.442695, %v1075_v2 }
 0x32b   : > { %v1453_v8 = vpop.eup %1452  ;;  %1474 = vrcp.f32 %v1129_v5  ;;  %v1134_v9 = vadd.f32 1.0, %v1451_v6 }
 0x32c   : > { %v1455_v10 = vpop.eup %1454  ;;  %1176 = vst.msk [vmem:[%s1733_s21 + $0x18] sm:$0xff] %vm1172_vm0, %v1453_v8  ;;  %1476 = vpow2.f32 %v1311_v7 }
 0x32d   : > { %v1457_v38 = vpop.eup %1456  ;;  %1478 = vrcp.f32 %v1134_v9  ;;  %v1135_v3 = vadd.f32 1.0, %v1455_v10 }
 0x32e   : > { %v1459_v11 = vpop.eup %1458  ;;  %1174 = vst.msk [vmem:[%s1733_s21 + $0x8] sm:$0xff] %vm1172_vm0, %v1457_v38 }
 0x32f   : > { %v1461_v12 = vpop.eup %1460  ;;  %1480 = vrcp.f32 %v1135_v3  ;;  %v1132_v13 = vadd.f32 1.0, %v1459_v11 }
 0x330   : > { %v1133_v15 = vadd.f32 1.0, %v1461_v12 }
 0x331   : > { %v1463_v16 = vpop.eup %1462  ;;  %1482 = vrcp.f32 %v1132_v13 }
 0x332   : > { %v1465_v17 = vpop.eup %1464  ;;  %1179 = vst.msk [vmem:[%s1733_s21 + $0x30] sm:$0xff] %vm1172_vm0, %v1463_v16  ;;  %1484 = vrcp.f32 %v1133_v15 }
 0x333   : > { %v1467_v18 = vpop.eup %1466  ;;  %v1136_v19 = vadd.f32 1.0, %v1465_v17 }
 0x334   : > { %1180 = vst.msk [vmem:[%s1733_s21 + $0x38] sm:$0xff] %vm1172_vm0, %v1467_v18 }
 0x335   : > { %v1469_v20 = vpop.eup %1468  ;;  %1486 = vrcp.f32 %v1136_v19 }
 0x336   : > { %v1471_v21 = vpop.eup %1470  ;;  %1177 = vst.msk [vmem:[%s1733_s21 + $0x20] sm:$0xff] %vm1172_vm0, %v1469_v20 }
 0x337   : > { %v1473_v22 = vpop.eup %1472  ;;  %v1137_v14 = vadd.f32 1.0, %v1471_v21 }
 0x338   : > { %v1475_v23 = vpop.eup %1474  ;;  %v1138_v25 = vadd.f32 1.0, %v1473_v22 }
 0x339   : > { %v1477_v26 = vpop.eup %1476  ;;  %1178 = vst.msk [vmem:[%s1733_s21 + $0x28] sm:$0xff] %vm1172_vm0, %v1475_v23  ;;  %1488 = vrcp.f32 %v1137_v14 }
 0x33a   : > { %v1479_v27 = vpop.eup %1478  ;;  %1490 = vrcp.f32 %v1138_v25  ;;  %v1139_v28 = vadd.f32 1.0, %v1477_v26 }
 0x33b   : > { %1183 = vst.msk [vmem:[%s1733_s21 + $0x50] sm:$0xff] %vm1172_vm0, %v1479_v27 }
 0x33c   : > { %v1481_v29 = vpop.eup %1480  ;;  %1492 = vrcp.f32 %v1139_v28 }
 0x33d   : > { %1184 = vst.msk [vmem:[%s1733_s21 + $0x58] sm:$0xff] %vm1172_vm0, %v1481_v29 }
 0x33e   : > { %v1483_v30 = vpop.eup %1482 }
 0x33f   : > { %v1485_v31 = vpop.eup %1484  ;;  %1181 = vst.msk [vmem:[%s1733_s21 + $0x40] sm:$0xff] %vm1172_vm0, %v1483_v30 }
 0x340   : > { %1182 = vst.msk [vmem:[%s1733_s21 + $0x48] sm:$0xff] %vm1172_vm0, %v1485_v31 }
 0x342   : > { %v1487_v32 = vpop.eup %1486 }
 0x343   : > { %1185 = vst.msk [vmem:[%s1733_s21 + $0x60] sm:$0xff] %vm1172_vm0, %v1487_v32 }
 0x346   : > { %v1489_v33 = vpop.eup %1488 }
 0x347   : > { %v1491_v34 = vpop.eup %1490  ;;  %1186 = vst.msk [vmem:[%s1733_s21 + $0x68] sm:$0xff] %vm1172_vm0, %v1489_v33 }
 0x348   : > { %1187 = vst.msk [vmem:[%s1733_s21 + $0x70] sm:$0xff] %vm1172_vm0, %v1491_v34 }
 0x349   : > { %v1493_v35 = vpop.eup %1492 }
 0x34a   : > { %1188 = vst.msk [vmem:[%s1733_s21 + $0x78] sm:$0xff] %vm1172_vm0, %v1493_v35 }
 0x34b PF: > { %s20_s11 = sadd.s32 1, %s1500_s11  }
 0x34c   : > { %p17_p4 = scmp.ge.s32.totalorder %s20_s11, 4  }
 0x34e   :  { %19 = sbr.rel (!%p17_p4) target bundleno = 2 (0x2), region = 86 }

</bundles_post_ra>
